<compile_context>
chip_gen: v6e
topology: v6e:2x2x1
jax: 0.10.0
libtpu: 0.0.40
codegen_flags: <defaults>
</compile_context>

<pallas_src>
import functools

import numpy as np
import jax
import jax.numpy as jnp
from jax import lax
from jax.experimental import pallas as pl
from jax.experimental.pallas import tpu as pltpu

EPS = 1e-5


def _bottleneck_kernel(x_ref, s1_ref, b1_ref, w1_ref, b2_ref, w2_ref, m_ref,
                       o_ref, *, W, C, use_vpu_1x1):
    # Per grid step: one lane tile of TILE columns (whole images), channel-major.
    #   x_ref : (C, T)        input columns (f32)
    #   s1/b1 : (C, 1)        folded BN1 scale / bias (f32)
    #   w1    : (IC, C)       1x1 conv weight with BN2 scale folded in
    #   b2    : (IC, 1)       folded BN2 bias (f32)
    #   w2    : (Gp, 9*IC)    3x3 conv weight, (kh,kw)-major / ic-minor, rows padded
    #   m_ref : (9, T)        precomputed border masks (compute dtype)
    #   o_ref : (Gp, T)       ONLY the new growth channels (concat done outside)
    x = x_ref[...]                                             # (C, T) f32
    a1 = jnp.maximum(x * s1_ref[...] + b1_ref[...], 0.0)       # BN1 + ReLU

    if use_vpu_1x1:
        # K = C is tiny: C broadcast-FMA passes on the VPU beat a nearly-empty
        # MXU pass and free the vex slot for the 3x3 matmul.
        h = w1_ref[:, 0:1] * a1[0:1, :]
        for c in range(1, C):
            h = h + w1_ref[:, c:c + 1] * a1[c:c + 1, :]        # (IC, T) f32
    else:
        h = jnp.dot(w1_ref[...], a1.astype(w1_ref.dtype),
                    preferred_element_type=jnp.float32)        # (IC, T) f32

    # BN2 scale is folded into w1; only the bias remains.
    a2 = jnp.maximum(h + b2_ref[...], 0.0)                     # (IC, T) f32
    a2 = a2.astype(w2_ref.dtype)            # bf16-early im2col on v6e/v7x path

    # 3x3 conv (pad=1) as ONE im2col matmul with K = 9*IC.  Shifted copies of
    # a2 along the flattened spatial axis; precomputed masks zero wrapped /
    # out-of-bounds taps (in-bounds taps never cross an image boundary because
    # every tile holds whole images).
    # TODO(synk): on v7x with IC >= 128 a per-tap accumulation variant that
    # skips materializing the (9*IC, T) patches buffer would save VMEM.
    masks = m_ref[...]                                         # (9, T)
    pieces = []
    for kh in range(3):
        for kw in range(3):
            s = (kh - 1) * W + (kw - 1)                        # flat src offset
            shifted = jnp.roll(a2, -s, axis=1) if s != 0 else a2
            pieces.append(shifted * masks[kh * 3 + kw:kh * 3 + kw + 1, :])
    patches = jnp.concatenate(pieces, axis=0)                  # (9*IC, T)

    out = jnp.dot(w2_ref[...], patches,
                  preferred_element_type=jnp.float32)          # (Gp, T) f32
    o_ref[...] = out.astype(o_ref.dtype)                       # lane-dense store


def bottleneck_forward(x_nchw, params, use_bf16=True,
                       vmem_budget_bytes=48 * 1024 * 1024):
    """Fused Bottleneck forward. x_nchw: (N, C, H, W) f32. Returns NCHW."""
    (g1, be1, m1, v1, w1_oihw, g2, be2, m2, v2, w2_oihw) = params

    N, C, H, W = x_nchw.shape
    IC = w1_oihw.shape[0]
    G = w2_oihw.shape[0]
    HW = H * W
    cols = N * HW
    G_pad = -(-G // 8) * 8                       # pad growth channels to 8 rows

    cdt = jnp.bfloat16 if use_bf16 else jnp.float32
    itemsize = 2 if use_bf16 else 4
    use_vpu_1x1 = C < 32

    # ---- Fold BN params (inference form); fold BN2 scale into w1 rows ----
    inv1 = g1 / jnp.sqrt(v1 + EPS)
    s1 = inv1.reshape(C, 1).astype(jnp.float32)
    b1 = (be1 - m1 * inv1).reshape(C, 1).astype(jnp.float32)
    inv2 = g2 / jnp.sqrt(v2 + EPS)
    b2 = (be2 - m2 * inv2).reshape(IC, 1).astype(jnp.float32)

    w1_dt = jnp.float32 if use_vpu_1x1 else cdt
    w1 = (w1_oihw[:, :, 0, 0] * inv2[:, None]).astype(w1_dt)          # (IC, C)
    # OIHW -> (G, 3, 3, IC) -> (G, 9*IC), rows zero-padded to G_pad.
    w2 = jnp.transpose(w2_oihw, (0, 2, 3, 1)).reshape(G, 9 * IC)
    w2 = jnp.pad(w2, ((0, G_pad - G), (0, 0))).astype(cdt)            # (Gp, 9IC)

    # ---- Channel-major, batch*spatial on lanes (one transpose) ----
    x_flat = jnp.transpose(x_nchw, (1, 0, 2, 3)).reshape(C, cols)
    x_flat = x_flat.astype(jnp.float32)

    # ---- Lane-tile choice: whole images per tile, sized against a VMEM
    #      budget that also fits v7x's 64 MiB per-TC VMEM. ----
    per_col = (4 * (3 * C + 2 * G_pad + 2 * IC)          # x/out dbl-buf + a1/h/a2
               + itemsize * (9 + 10 * IC))               # masks + patches + cast
    target_cols = 8192
    m_best = 1
    for m in range(1, N + 1):
        if N % m:
            continue
        t = m * HW
        if t <= target_cols and t * per_col <= vmem_budget_bytes:
            m_best = m
    TILE = m_best * HW
    if TILE % 128 != 0:
        # TODO(synk): odd HW -> fall back to one full-width tile (full-dim
        # blocks are always layout-legal).
        TILE = cols
    grid = (cols // TILE,)

    # ---- Precomputed 3x3 border masks, identical for every tile ----
    pos = jnp.arange(HW, dtype=jnp.int32)
    hh = pos // W
    ww = pos % W
    mrows = []
    for kh in range(3):
        for kw in range(3):
            di, dj = kh - 1, kw - 1
            mrows.append((hh + di >= 0) & (hh + di < H)
                         & (ww + dj >= 0) & (ww + dj < W))
    mask_hw = jnp.stack(mrows, axis=0).astype(cdt)                    # (9, HW)
    mask_tile = jnp.tile(mask_hw, (1, TILE // HW))                    # (9, TILE)

    flops = 2 * cols * (C * IC + 9 * IC * G_pad)
    bytes_accessed = (4 * cols * (C + G_pad)
                      + 4 * (2 * C + IC + IC * C)
                      + itemsize * (G_pad * 9 * IC + 9 * TILE))

    grid_spec = pltpu.PrefetchScalarGridSpec(
        num_scalar_prefetch=0,
        grid=grid,
        in_specs=[
            pl.BlockSpec((C, TILE), lambda t: (0, t)),
            pl.BlockSpec((C, 1), lambda t: (0, 0)),
            pl.BlockSpec((C, 1), lambda t: (0, 0)),
            pl.BlockSpec((IC, C), lambda t: (0, 0)),
            pl.BlockSpec((IC, 1), lambda t: (0, 0)),
            pl.BlockSpec((G_pad, 9 * IC), lambda t: (0, 0)),
            pl.BlockSpec((9, TILE), lambda t: (0, 0)),
        ],
        out_specs=pl.BlockSpec((G_pad, TILE), lambda t: (0, t)),
    )

    out_flat = pl.pallas_call(
        functools.partial(_bottleneck_kernel, W=W, C=C,
                          use_vpu_1x1=use_vpu_1x1),
        out_shape=jax.ShapeDtypeStruct((G_pad, cols), jnp.float32),
        grid_spec=grid_spec,
        compiler_params=pltpu.CompilerParams(
            dimension_semantics=("parallel",),
            # 64 MiB: safe on v7x; on v5e/v6e this can be raised toward 96 MiB
            # when sweeping TILE upward.
            vmem_limit_bytes=64 * 1024 * 1024,
        ),
        cost_estimate=pl.CostEstimate(
            flops=flops, transcendentals=0, bytes_accessed=bytes_accessed),
    )(x_flat, s1, b1, w1, b2, w2, mask_tile)

    new = out_flat[:G].reshape(G, N, H, W).transpose(1, 0, 2, 3)
    # TODO(synk): in a full DenseNet, write the G new channels into a
    # persistent aliased feature buffer instead of concatenating per layer.
    return jnp.concatenate([x_nchw.astype(jnp.float32), new], axis=1)


def reference_forward(x_nchw, params):
    """Pure-JAX reference (NCHW, mirrors the PyTorch forward in eval mode)."""
    (g1, be1, m1, v1, w1_oihw, g2, be2, m2, v2, w2_oihw) = params

    def bn(x, g, b, m, v):
        cs = (1, -1, 1, 1)
        return (x - m.reshape(cs)) / jnp.sqrt(v.reshape(cs) + EPS) \
            * g.reshape(cs) + b.reshape(cs)

    dn = ('NCHW', 'OIHW', 'NCHW')
    a1 = jnp.maximum(bn(x_nchw, g1, be1, m1, v1), 0.0)
    h = lax.conv_general_dilated(a1, w1_oihw, (1, 1), 'VALID',
                                 dimension_numbers=dn)
    a2 = jnp.maximum(bn(h, g2, be2, m2, v2), 0.0)
    out = lax.conv_general_dilated(a2, w2_oihw, (1, 1), ((1, 1), (1, 1)),
                                   dimension_numbers=dn)
    return jnp.concatenate([x_nchw, out], axis=1)


def init_params(key, nChannels, growthRate):
    interChannels = 4 * growthRate
    ks = jax.random.split(key, 10)
    g1 = jax.random.normal(ks[0], (nChannels,), jnp.float32) * 0.1 + 1.0
    be1 = jax.random.normal(ks[1], (nChannels,), jnp.float32) * 0.1
    m1 = jax.random.normal(ks[2], (nChannels,), jnp.float32) * 0.1
    v1 = jax.random.uniform(ks[3], (nChannels,), jnp.float32, 0.5, 1.5)
    w1 = jax.random.normal(ks[4], (interChannels, nChannels, 1, 1),
                           jnp.float32) * 0.2
    g2 = jax.random.normal(ks[5], (interChannels,), jnp.float32) * 0.1 + 1.0
    be2 = jax.random.normal(ks[6], (interChannels,), jnp.float32) * 0.1
    m2 = jax.random.normal(ks[7], (interChannels,), jnp.float32) * 0.1
    v2 = jax.random.uniform(ks[8], (interChannels,), jnp.float32, 0.5, 1.5)
    w2 = jax.random.normal(ks[9], (growthRate, interChannels, 3, 3),
                           jnp.float32) * 0.1
    return (g1, be1, m1, v1, w1, g2, be2, m2, v2, w2)


if __name__ == "__main__":
    nChannels, growthRate = 4, 4          # interChannels = 16
    N, H, W = 2, 16, 16

    key = jax.random.PRNGKey(0)
    kx, kp = jax.random.split(key)
    x = jax.random.normal(kx, (N, nChannels, H, W), jnp.float32)
    params = init_params(kp, nChannels, growthRate)

    y_ref = jax.block_until_ready(reference_forward(x, params))

    # f32 matmul path: tight check (v5e-style path).
    y = jax.block_until_ready(bottleneck_forward(x, params, use_bf16=False))
    assert y.shape == (N, nChannels + growthRate, H, W), y.shape
    np.testing.assert_allclose(np.asarray(y), np.asarray(y_ref),
                               rtol=1e-3, atol=1e-3)

    # bf16 im2col / matmul-operand path (f32 accumulation): looser tolerance.
    y16 = jax.block_until_ready(bottleneck_forward(x, params, use_bf16=True))
    np.testing.assert_allclose(np.asarray(y16), np.asarray(y_ref),
                               rtol=5e-2, atol=5e-2)

    print("KERNEL_OK")
</pallas_src>

<mosaic_0001>
module attributes {stable_mosaic.version = 11 : i64} {
  func.func @_bottleneck_kernel(%arg0: i32, %arg1: memref<4x512xf32, #tpu.memory_space<vmem>>, %arg2: memref<4x1xf32, #tpu.memory_space<vmem>>, %arg3: memref<4x1xf32, #tpu.memory_space<vmem>>, %arg4: memref<16x4xf32, #tpu.memory_space<vmem>>, %arg5: memref<16x1xf32, #tpu.memory_space<vmem>>, %arg6: memref<8x144xf32, #tpu.memory_space<vmem>>, %arg7: memref<9x512xf32, #tpu.memory_space<vmem>>, %arg8: memref<8x512xf32, #tpu.memory_space<vmem>>) attributes {dimension_semantics = [#tpu.dimension_semantics<parallel>], iteration_bounds = array<i64: 1>, scalar_prefetch = 0 : i64, scratch_operands = 0 : i64, tpu.core_type = #tpu.core_type<tc>, window_params = [{transform_indices = @transform_0, window_bounds = array<i64: 4, 512>}, {pipeline_mode = #tpu.pipeline_mode<synchronous>, transform_indices = @transform_1, window_bounds = array<i64: 4, 1>}, {pipeline_mode = #tpu.pipeline_mode<synchronous>, transform_indices = @transform_2, window_bounds = array<i64: 4, 1>}, {pipeline_mode = #tpu.pipeline_mode<synchronous>, transform_indices = @transform_3, window_bounds = array<i64: 16, 4>}, {pipeline_mode = #tpu.pipeline_mode<synchronous>, transform_indices = @transform_4, window_bounds = array<i64: 16, 1>}, {pipeline_mode = #tpu.pipeline_mode<synchronous>, transform_indices = @transform_5, window_bounds = array<i64: 8, 144>}, {pipeline_mode = #tpu.pipeline_mode<synchronous>, transform_indices = @transform_6, window_bounds = array<i64: 9, 512>}, {transform_indices = @transform_7, window_bounds = array<i64: 8, 512>}]} {
    %c0 = arith.constant 0 : index
    %c0_0 = arith.constant 0 : index
    %0 = vector.load %arg1[%c0, %c0_0] : memref<4x512xf32, #tpu.memory_space<vmem>>, vector<4x512xf32>
    %c0_1 = arith.constant 0 : index
    %c0_2 = arith.constant 0 : index
    %1 = vector.load %arg2[%c0_1, %c0_2] : memref<4x1xf32, #tpu.memory_space<vmem>>, vector<4x1xf32>
    %2 = vector.broadcast %1 : vector<4x1xf32> to vector<4x512xf32>
    %3 = arith.mulf %0, %2 : vector<4x512xf32>
    %c0_3 = arith.constant 0 : index
    %c0_4 = arith.constant 0 : index
    %4 = vector.load %arg3[%c0_3, %c0_4] : memref<4x1xf32, #tpu.memory_space<vmem>>, vector<4x1xf32>
    %5 = vector.broadcast %4 : vector<4x1xf32> to vector<4x512xf32>
    %6 = arith.addf %3, %5 : vector<4x512xf32>
    %cst = arith.constant 0.000000e+00 : f32
    %7 = vector.broadcast %cst : f32 to vector<4x512xf32>
    %8 = arith.maximumf %6, %7 : vector<4x512xf32>
    %c0_5 = arith.constant 0 : index
    %c0_6 = arith.constant 0 : index
    %9 = vector.load %arg4[%c0_5, %c0_6] : memref<16x4xf32, #tpu.memory_space<vmem>>, vector<16x1xf32>
    %10 = vector.extract_strided_slice %8 {offsets = [0, 0], sizes = [1, 512], strides = [1, 1]} : vector<4x512xf32> to vector<1x512xf32>
    %11 = vector.broadcast %9 : vector<16x1xf32> to vector<16x512xf32>
    %12 = vector.broadcast %10 : vector<1x512xf32> to vector<16x512xf32>
    %13 = arith.mulf %11, %12 : vector<16x512xf32>
    %c0_7 = arith.constant 0 : index
    %c1 = arith.constant 1 : index
    %14 = vector.load %arg4[%c0_7, %c1] : memref<16x4xf32, #tpu.memory_space<vmem>>, vector<16x1xf32>
    %15 = vector.extract_strided_slice %8 {offsets = [1, 0], sizes = [1, 512], strides = [1, 1]} : vector<4x512xf32> to vector<1x512xf32>
    %16 = vector.broadcast %14 : vector<16x1xf32> to vector<16x512xf32>
    %17 = vector.broadcast %15 : vector<1x512xf32> to vector<16x512xf32>
    %18 = arith.mulf %16, %17 : vector<16x512xf32>
    %19 = arith.addf %13, %18 : vector<16x512xf32>
    %c0_8 = arith.constant 0 : index
    %c2 = arith.constant 2 : index
    %20 = vector.load %arg4[%c0_8, %c2] : memref<16x4xf32, #tpu.memory_space<vmem>>, vector<16x1xf32>
    %21 = vector.extract_strided_slice %8 {offsets = [2, 0], sizes = [1, 512], strides = [1, 1]} : vector<4x512xf32> to vector<1x512xf32>
    %22 = vector.broadcast %20 : vector<16x1xf32> to vector<16x512xf32>
    %23 = vector.broadcast %21 : vector<1x512xf32> to vector<16x512xf32>
    %24 = arith.mulf %22, %23 : vector<16x512xf32>
    %25 = arith.addf %19, %24 : vector<16x512xf32>
    %c0_9 = arith.constant 0 : index
    %c3 = arith.constant 3 : index
    %26 = vector.load %arg4[%c0_9, %c3] : memref<16x4xf32, #tpu.memory_space<vmem>>, vector<16x1xf32>
    %27 = vector.extract_strided_slice %8 {offsets = [3, 0], sizes = [1, 512], strides = [1, 1]} : vector<4x512xf32> to vector<1x512xf32>
    %28 = vector.broadcast %26 : vector<16x1xf32> to vector<16x512xf32>
    %29 = vector.broadcast %27 : vector<1x512xf32> to vector<16x512xf32>
    %30 = arith.mulf %28, %29 : vector<16x512xf32>
    %31 = arith.addf %25, %30 : vector<16x512xf32>
    %c0_10 = arith.constant 0 : index
    %c0_11 = arith.constant 0 : index
    %32 = vector.load %arg5[%c0_10, %c0_11] : memref<16x1xf32, #tpu.memory_space<vmem>>, vector<16x1xf32>
    %33 = vector.broadcast %32 : vector<16x1xf32> to vector<16x512xf32>
    %34 = arith.addf %31, %33 : vector<16x512xf32>
    %cst_12 = arith.constant 0.000000e+00 : f32
    %35 = vector.broadcast %cst_12 : f32 to vector<16x512xf32>
    %36 = arith.maximumf %34, %35 : vector<16x512xf32>
    %c0_13 = arith.constant 0 : index
    %c0_14 = arith.constant 0 : index
    %37 = vector.load %arg7[%c0_13, %c0_14] : memref<9x512xf32, #tpu.memory_space<vmem>>, vector<9x512xf32>
    %38 = vector.extract_strided_slice %36 {offsets = [0, 495], sizes = [16, 17], strides = [1, 1]} : vector<16x512xf32> to vector<16x17xf32>
    %39 = vector.extract_strided_slice %36 {offsets = [0, 0], sizes = [16, 495], strides = [1, 1]} : vector<16x512xf32> to vector<16x495xf32>
    %40 = tpu.concatenate %38, %39 in 1 : vector<16x17xf32>, vector<16x495xf32> -> vector<16x512xf32>
    %41 = vector.extract_strided_slice %37 {offsets = [0, 0], sizes = [1, 512], strides = [1, 1]} : vector<9x512xf32> to vector<1x512xf32>
    %42 = vector.broadcast %41 : vector<1x512xf32> to vector<16x512xf32>
    %43 = arith.mulf %40, %42 : vector<16x512xf32>
    %44 = vector.extract_strided_slice %36 {offsets = [0, 496], sizes = [16, 16], strides = [1, 1]} : vector<16x512xf32> to vector<16x16xf32>
    %45 = vector.extract_strided_slice %36 {offsets = [0, 0], sizes = [16, 496], strides = [1, 1]} : vector<16x512xf32> to vector<16x496xf32>
    %46 = tpu.concatenate %44, %45 in 1 : vector<16x16xf32>, vector<16x496xf32> -> vector<16x512xf32>
    %47 = vector.extract_strided_slice %37 {offsets = [1, 0], sizes = [1, 512], strides = [1, 1]} : vector<9x512xf32> to vector<1x512xf32>
    %48 = vector.broadcast %47 : vector<1x512xf32> to vector<16x512xf32>
    %49 = arith.mulf %46, %48 : vector<16x512xf32>
    %50 = vector.extract_strided_slice %36 {offsets = [0, 497], sizes = [16, 15], strides = [1, 1]} : vector<16x512xf32> to vector<16x15xf32>
    %51 = vector.extract_strided_slice %36 {offsets = [0, 0], sizes = [16, 497], strides = [1, 1]} : vector<16x512xf32> to vector<16x497xf32>
    %52 = tpu.concatenate %50, %51 in 1 : vector<16x15xf32>, vector<16x497xf32> -> vector<16x512xf32>
    %53 = vector.extract_strided_slice %37 {offsets = [2, 0], sizes = [1, 512], strides = [1, 1]} : vector<9x512xf32> to vector<1x512xf32>
    %54 = vector.broadcast %53 : vector<1x512xf32> to vector<16x512xf32>
    %55 = arith.mulf %52, %54 : vector<16x512xf32>
    %56 = vector.extract_strided_slice %36 {offsets = [0, 511], sizes = [16, 1], strides = [1, 1]} : vector<16x512xf32> to vector<16x1xf32>
    %57 = vector.extract_strided_slice %36 {offsets = [0, 0], sizes = [16, 511], strides = [1, 1]} : vector<16x512xf32> to vector<16x511xf32>
    %58 = tpu.concatenate %56, %57 in 1 : vector<16x1xf32>, vector<16x511xf32> -> vector<16x512xf32>
    %59 = vector.extract_strided_slice %37 {offsets = [3, 0], sizes = [1, 512], strides = [1, 1]} : vector<9x512xf32> to vector<1x512xf32>
    %60 = vector.broadcast %59 : vector<1x512xf32> to vector<16x512xf32>
    %61 = arith.mulf %58, %60 : vector<16x512xf32>
    %62 = vector.extract_strided_slice %37 {offsets = [4, 0], sizes = [1, 512], strides = [1, 1]} : vector<9x512xf32> to vector<1x512xf32>
    %63 = vector.broadcast %62 : vector<1x512xf32> to vector<16x512xf32>
    %64 = arith.mulf %36, %63 : vector<16x512xf32>
    %65 = vector.extract_strided_slice %36 {offsets = [0, 1], sizes = [16, 511], strides = [1, 1]} : vector<16x512xf32> to vector<16x511xf32>
    %66 = vector.extract_strided_slice %36 {offsets = [0, 0], sizes = [16, 1], strides = [1, 1]} : vector<16x512xf32> to vector<16x1xf32>
    %67 = tpu.concatenate %65, %66 in 1 : vector<16x511xf32>, vector<16x1xf32> -> vector<16x512xf32>
    %68 = vector.extract_strided_slice %37 {offsets = [5, 0], sizes = [1, 512], strides = [1, 1]} : vector<9x512xf32> to vector<1x512xf32>
    %69 = vector.broadcast %68 : vector<1x512xf32> to vector<16x512xf32>
    %70 = arith.mulf %67, %69 : vector<16x512xf32>
    %71 = vector.extract_strided_slice %36 {offsets = [0, 15], sizes = [16, 497], strides = [1, 1]} : vector<16x512xf32> to vector<16x497xf32>
    %72 = vector.extract_strided_slice %36 {offsets = [0, 0], sizes = [16, 15], strides = [1, 1]} : vector<16x512xf32> to vector<16x15xf32>
    %73 = tpu.concatenate %71, %72 in 1 : vector<16x497xf32>, vector<16x15xf32> -> vector<16x512xf32>
    %74 = vector.extract_strided_slice %37 {offsets = [6, 0], sizes = [1, 512], strides = [1, 1]} : vector<9x512xf32> to vector<1x512xf32>
    %75 = vector.broadcast %74 : vector<1x512xf32> to vector<16x512xf32>
    %76 = arith.mulf %73, %75 : vector<16x512xf32>
    %77 = vector.extract_strided_slice %36 {offsets = [0, 16], sizes = [16, 496], strides = [1, 1]} : vector<16x512xf32> to vector<16x496xf32>
    %78 = vector.extract_strided_slice %36 {offsets = [0, 0], sizes = [16, 16], strides = [1, 1]} : vector<16x512xf32> to vector<16x16xf32>
    %79 = tpu.concatenate %77, %78 in 1 : vector<16x496xf32>, vector<16x16xf32> -> vector<16x512xf32>
    %80 = vector.extract_strided_slice %37 {offsets = [7, 0], sizes = [1, 512], strides = [1, 1]} : vector<9x512xf32> to vector<1x512xf32>
    %81 = vector.broadcast %80 : vector<1x512xf32> to vector<16x512xf32>
    %82 = arith.mulf %79, %81 : vector<16x512xf32>
    %83 = vector.extract_strided_slice %36 {offsets = [0, 17], sizes = [16, 495], strides = [1, 1]} : vector<16x512xf32> to vector<16x495xf32>
    %84 = vector.extract_strided_slice %36 {offsets = [0, 0], sizes = [16, 17], strides = [1, 1]} : vector<16x512xf32> to vector<16x17xf32>
    %85 = tpu.concatenate %83, %84 in 1 : vector<16x495xf32>, vector<16x17xf32> -> vector<16x512xf32>
    %86 = vector.extract_strided_slice %37 {offsets = [8, 0], sizes = [1, 512], strides = [1, 1]} : vector<9x512xf32> to vector<1x512xf32>
    %87 = vector.broadcast %86 : vector<1x512xf32> to vector<16x512xf32>
    %88 = arith.mulf %85, %87 : vector<16x512xf32>
    %89 = tpu.concatenate %43, %49, %55, %61, %64, %70, %76, %82, %88 in 0 : vector<16x512xf32>, vector<16x512xf32>, vector<16x512xf32>, vector<16x512xf32>, vector<16x512xf32>, vector<16x512xf32>, vector<16x512xf32>, vector<16x512xf32>, vector<16x512xf32> -> vector<144x512xf32>
    %c0_15 = arith.constant 0 : index
    %c0_16 = arith.constant 0 : index
    %90 = vector.load %arg6[%c0_15, %c0_16] : memref<8x144xf32, #tpu.memory_space<vmem>>, vector<8x144xf32>
    %cst_17 = arith.constant dense<0.000000e+00> : vector<8x512xf32>
    %91 = tpu.matmul %90, %89, %cst_17 {dimension_numbers = #tpu.dot_dimension_numbers<[1], [0], [0], [1], [0, 0, 1, 1], [], []>} : vector<8x144xf32>, vector<144x512xf32>, vector<8x512xf32> -> vector<8x512xf32>
    %c0_18 = arith.constant 0 : index
    %c0_19 = arith.constant 0 : index
    %92 = vector.load %arg8[%c0_18, %c0_19] : memref<8x512xf32, #tpu.memory_space<vmem>>, vector<8x512xf32>
    tpu.vector_store %arg8[%c0_18, %c0_19], %91 {strides = array<i32>} : memref<8x512xf32, #tpu.memory_space<vmem>>, vector<8x512xf32>,
    return
  }
  func.func @transform_0(%arg0: i32) -> (i32, i32) {
    %c0_i32 = arith.constant 0 : i32
    %c0_i32_0 = arith.constant 0 : i32
    return %c0_i32, %arg0 : i32, i32
  }
  func.func @transform_1(%arg0: i32) -> (i32, i32) {
    %c0_i32 = arith.constant 0 : i32
    %c0_i32_0 = arith.constant 0 : i32
    %c0_i32_1 = arith.constant 0 : i32
    return %c0_i32, %c0_i32_0 : i32, i32
  }
  func.func @transform_2(%arg0: i32) -> (i32, i32) {
    %c0_i32 = arith.constant 0 : i32
    %c0_i32_0 = arith.constant 0 : i32
    %c0_i32_1 = arith.constant 0 : i32
    return %c0_i32, %c0_i32_0 : i32, i32
  }
  func.func @transform_3(%arg0: i32) -> (i32, i32) {
    %c0_i32 = arith.constant 0 : i32
    %c0_i32_0 = arith.constant 0 : i32
    %c0_i32_1 = arith.constant 0 : i32
    return %c0_i32, %c0_i32_0 : i32, i32
  }
  func.func @transform_4(%arg0: i32) -> (i32, i32) {
    %c0_i32 = arith.constant 0 : i32
    %c0_i32_0 = arith.constant 0 : i32
    %c0_i32_1 = arith.constant 0 : i32
    return %c0_i32, %c0_i32_0 : i32, i32
  }
  func.func @transform_5(%arg0: i32) -> (i32, i32) {
    %c0_i32 = arith.constant 0 : i32
    %c0_i32_0 = arith.constant 0 : i32
    %c0_i32_1 = arith.constant 0 : i32
    return %c0_i32, %c0_i32_0 : i32, i32
  }
  func.func @transform_6(%arg0: i32) -> (i32, i32) {
    %c0_i32 = arith.constant 0 : i32
    %c0_i32_0 = arith.constant 0 : i32
    %c0_i32_1 = arith.constant 0 : i32
    return %c0_i32, %c0_i32_0 : i32, i32
  }
  func.func @transform_7(%arg0: i32) -> (i32, i32) {
    %c0_i32 = arith.constant 0 : i32
    %c0_i32_0 = arith.constant 0 : i32
    return %c0_i32, %arg0 : i32, i32
  }
}

</mosaic_0001>

<bundles_post_ra>
// kernel: tpu_custom_call.1
= control target key start
LH: loop header
LB: loop body
LE: loop exit
PB: predicated region body
PF: predicated region fallthrough
CT: control target
= control target key end

     0   :  { %12 = vsyncpa [#allocation3], 0  ;;  %s1496_s0 = inlined_call_operand.vmem [shape: f32[4,512], index: 0, kind: input, shape index: {}]   ;;  %s1497_s1 = inlined_call_operand.vmem [shape: f32[4,1], index: 1, kind: input, shape index: {}]   ;;  %s1498_s2 = inlined_call_operand.vmem [shape: f32[4,1], index: 2, kind: input, shape index: {}]   ;;  %s1499_s3 = inlined_call_operand.vmem [shape: f32[16,4], index: 3, kind: input, shape index: {}]   ;;  %s1500_s4 = inlined_call_operand.vmem [shape: f32[16,1], index: 4, kind: input, shape index: {}]   ;;  %s1501_s5 = inlined_call_operand.vmem [shape: f32[8,144], index: 5, kind: input, shape index: {}]   ;;  %s1502_s6 = inlined_call_operand.hbm [shape: f32[9,512], index: 6, kind: input, shape index: {}]   ;;  %s1503_s7 = inlined_call_operand.hbm [shape: f32[8,512], index: 7, kind: output, shape index: {}]  }
   0x1   :  { %13 = vsyncpa [#allocation4], 0  ;;  %s1095_s24 = smov [#allocation2]  }
   0x2   :  { %s31_s25 = sshll.u32 %s1095_s24, 4  ;;  %s32_s25 = int_to_ptr.vmem [resolvable:$true] %s31_s25 }
   0x3   :  { %s1059_s26 = scalar_lea.vmem %s32_s25, 1024  ;;  %p1064_p1 = scmp.lt.s32.totalorder %s32_s25, %s32_s25 }
   0x4   :  { %p1060_p0 = scmp.ne.s32.totalorder %s32_s25, %s1059_s26  ;;  %p1065_p2 = scmp.lt.s32.totalorder %s1059_s26, %s1059_s26 }
   0x6   :  { %p1066_p3 = por %p1065_p2, %p1064_p1 }
   0x8   :  { %p1067_p4 = pnand %p1066_p3, %p1060_p0 }
   0xa   :  { %1070 = shalt.err (!%p1067_p4)
}
   0xb   :  { %s1096_s27 = smov 512   ;;  %s1097_s28 = smov 32  }
   0xc   :  { %37 = dma.hbm_to_vmem [thread:$0]  %s1502_s6, 1024, %s32_s25, [#allocation3], %s1096_s27, %s1096_s27, %s1097_s28  }
   0xd   :  { %1091 = dma.done.wait [#allocation3], 1024  }
   0xe   :  { %1092 = vsyncadd [#allocation3], 4294966272  ;;  %v1098_v0 = vmov 0   ;;  %v76_v1 = vld [vmem:[%s1499_s3 + $0x8] sm:$0xff]  ;;  %v43_v2 = vld [vmem:[%s1497_s1] sm:$0xf]  ;;  %v51_v12 = vlaneseq }
   0xf   :  { %1043 = vset.pattern.permute.xlu1 %v1098_v0  ;;  %1042 = vset.pattern.permute.xlu0 %v1098_v0  ;;  %v58_v3 = vld [vmem:[%s1498_s2] sm:$0xf]  ;;  %v1099_v4 = vmov 1   ;;  %v1100_v6 = vmov 2   ;;  %v1101_v7 = vmov 3   ;;  %v314_v8 = vld [vmem:[%s1500_s4 + $0x8] sm:$0xff] }
  0x10   :  { %84 = vperm.xlu1 %1043, %v76_v1   ;;  %46 = vperm.xlu0 %1042, %v43_v2   ;;  %v75_v5 = vld [vmem:[%s1499_s3] sm:$0xff]  ;;  %v1102_v10 = vmov 839922192   ;;  %v52_v14 = vshrl.u32 %v51_v12, 7  ;;  %v42_v18 = vld [vmem:[%s1496_s0 + $0x8] sm:$0xff]  ;;  %s1105_s20 = smov 127  }
  0x11   :  { %v313_v9 = vld [vmem:[%s1500_s4] sm:$0xff]  ;;  %v49_v11 = vunpack.c.l.s4 %v1102_v10  ;;  %s1104_s4 = smov 113   ;;  %s1106_s21 = smov 1   ;;  %vm751_vm0 = vcmask 916480   ;;  %vm434_vm1 = vcmask 130048   ;;  %vm692_vm2 = vcmask 924672  }
  0x12   :  { %v41_v17 = vld [vmem:[%s1496_s0] sm:$0xff]  ;;  %v1179_v27 = vsub.s32 0, %v52_v14  ;;  %v1181_v28 = vsub.s32 4, %v52_v14  ;;  %v1183_v29 = vsub.s32 1, %v52_v14  ;;  %v1185_v30 = vsub.s32 5, %v52_v14  ;;  %s1103_s0 = smov 112  }
  0x13   :  { %v50_v13 = vunpack.c.0.s8 %v49_v11  ;;  %v1215_v51 = vsub.s32 2, %v52_v14  ;;  %v1217_v52 = vsub.s32 6, %v52_v14  ;;  %s1107_s22 = smov 15   ;;  %s1108_s23 = smov 16   ;;  %vm633_vm3 = vcmask 1039360  }
  0x14   :  { %1044 = vset.pattern.permute.xlu1 %v1099_v4  ;;  %61 = vperm.xlu0 %1042, %v58_v3   ;;  %v1229_v3 = vsub.s32 3, %v52_v14  ;;  %v1231_v4 = vsub.s32 7, %v52_v14  ;;  %s1109_s24 = smov 17   ;;  %s1110_s25 = smov 111   ;;  %vm552_vm4 = vcmask 7168   ;;  %vm493_vm5 = vcmask 121856  }
  0x15   :  { %138 = vperm.xlu1 %1044, %v76_v1   ;;  %v53_v15 = vsub.s32 %v50_v13, %v52_v14  ;;  %vm375_vm6 = vcmask 138240   ;;  %vm810_vm7 = vcmask 908288   ;;  %s1111_s30 = smov [#allocation5]  }
  0x16   :  { %s1010_s8 = sshll.u32 %s1111_s30, 4  ;;  %s1011_s8 = int_to_ptr.vmem [resolvable:$true] %s1010_s8 }
  0x17   :  { %s1071_s9 = scalar_lea.vmem %s1011_s8, 512  ;;  %p1076_p6 = scmp.lt.s32.totalorder %s1011_s8, %s1011_s8 }
  0x18   :  { %79 = vperm.xlu0 %1042, %v75_v5   ;;  %p1072_p5 = scmp.ne.s32.totalorder %s1011_s8, %s1071_s9  ;;  %p1077_p7 = scmp.lt.s32.totalorder %s1071_s9, %s1071_s9 }
  0x19   :  { %134 = vperm.xlu1 %1044, %v75_v5  }
  0x1a   :  { %p1078_p8 = por %p1077_p7, %p1076_p6 }
  0x1c   :  { %1045 = vset.pattern.permute.xlu0 %v1100_v6  ;;  %p1079_p9 = pnand %p1078_p8, %p1072_p5 }
  0x1d   :  { %1046 = vset.pattern.permute.xlu1 %v1100_v6  ;;  %198 = vperm.xlu0 %1045, %v76_v1  }
  0x1e   :  { %194 = vperm.xlu1 %1046, %v75_v5  }
  0x21   :  { %1048 = vset.pattern.permute.xlu0 %v1101_v7 }
  0x22   :  { %1047 = vset.pattern.permute.xlu1 %v1101_v7  ;;  %254 = vperm.xlu0 %1048, %v75_v5  }
  0x23   :  { %258 = vperm.xlu1 %1047, %v76_v1  }
  0x26   :  { %1050 = vset.pattern.permute.xlu0 %v1098_v0 }
  0x27   :  { %1049 = vset.pattern.permute.xlu1 %v1098_v0 }
  0x28   :  { %322 = vperm.xlu1 %1049, %v314_v8  }
  0x2c   :  { %317 = vperm.xlu1 %1049, %v313_v9  }
  0x8b   :  { %v47_v16 = vpop.permute.xlu0 %46  ;;  %v85_v20 = vpop.permute.xlu1 %84 }
  0x8c   :  { %v54_v19 = vrot.slane %v47_v16, %v53_v15 }
  0x8e   :  { %v56_v21 = vmul.f32 %v54_v19, %v41_v17  ;;  %v57_v22 = vmul.f32 %v54_v19, %v42_v18 }
  0x8f   :  { %v62_v23 = vpop.permute.xlu0 %61 }
  0x90   :  { %v69_v24 = vrot.slane %v62_v23, %v53_v15  ;;  %v139_v31 = vpop.permute.xlu1 %138 }
  0x92   :  { %v71_v25 = vadd.f32 %v69_v24, %v56_v21  ;;  %v72_v26 = vadd.f32 %v69_v24, %v57_v22 }
  0x93   :  { %v80_v61 = vpop.permute.xlu0 %79 }
  0x94   :  { %v1187_v32 = vmax.f32 %v71_v25, 0.0  ;;  %v1189_v33 = vmax.f32 %v72_v26, 0.0  ;;  %v135_v46 = vpop.permute.xlu1 %134 }
  0x96   :  { %v92_v34 = vrot.slane %v1187_v32, %v1179_v27  ;;  %v96_v35 = vrot.slane %v1187_v32, %v1181_v28  ;;  %v100_v36 = vrot.slane %v1189_v33, %v1179_v27  ;;  %v104_v37 = vrot.slane %v1189_v33, %v1181_v28 }
  0x97   :  { %v144_v38 = vrot.slane %v1187_v32, %v1183_v29  ;;  %v148_v39 = vrot.slane %v1187_v32, %v1185_v30  ;;  %v152_v40 = vrot.slane %v1189_v33, %v1183_v29  ;;  %v156_v41 = vrot.slane %v1189_v33, %v1185_v30 }
  0x98   :  { %v112_v42 = vrot.slane %v92_v34, %v1179_v27  ;;  %v116_v43 = vrot.slane %v96_v35, %v1179_v27  ;;  %v120_v44 = vrot.slane %v100_v36, %v1179_v27  ;;  %v124_v45 = vrot.slane %v104_v37, %v1179_v27  ;;  %v199_v13 = vpop.permute.xlu0 %198 }
  0x99   :  { %v164_v47 = vrot.slane %v144_v38, %v1183_v29  ;;  %v168_v48 = vrot.slane %v148_v39, %v1183_v29  ;;  %v172_v49 = vrot.slane %v152_v40, %v1183_v29  ;;  %v176_v50 = vrot.slane %v156_v41, %v1183_v29  ;;  %v1219_v62 = vpop.permute.xlu1 %194 }
  0x9a   :  { %v129_v53 = vmul.f32 %v112_v42, %v85_v20  ;;  %v130_v54 = vmul.f32 %v116_v43, %v85_v20  ;;  %v131_v55 = vmul.f32 %v120_v44, %v85_v20  ;;  %v132_v56 = vmul.f32 %v124_v45, %v85_v20 }
  0x9b   :  { %v181_v57 = vmul.f32 %v164_v47, %v139_v31  ;;  %v182_v58 = vmul.f32 %v168_v48, %v139_v31  ;;  %v183_v59 = vmul.f32 %v172_v49, %v139_v31  ;;  %v184_v60 = vmul.f32 %v176_v50, %v139_v31 }
  0x9c   :  { %v204_v63 = vrot.slane %v1187_v32, %v1215_v51  ;;  %v208_v0 = vrot.slane %v1187_v32, %v1217_v52  ;;  %v212_v1 = vrot.slane %v1189_v33, %v1215_v51  ;;  %v216_v2 = vrot.slane %v1189_v33, %v1217_v52 }
  0x9d   :  { %v189_v9 = vadd.f32 %v181_v57, %v129_v53  ;;  %v190_v10 = vadd.f32 %v182_v58, %v130_v54  ;;  %v125_v11 = vmul.f32 %v112_v42, %v80_v61  ;;  %v126_v12 = vmul.f32 %v116_v43, %v80_v61 }
  0x9e   :  { %v224_v5 = vrot.slane %v204_v63, %v1215_v51  ;;  %v228_v6 = vrot.slane %v208_v0, %v1215_v51  ;;  %v232_v7 = vrot.slane %v212_v1, %v1215_v51  ;;  %v236_v8 = vrot.slane %v216_v2, %v1215_v51  ;;  %v259_v26 = vpop.permute.xlu1 %258 }
  0x9f   :  { %v191_v15 = vadd.f32 %v183_v59, %v131_v55  ;;  %v192_v16 = vadd.f32 %v184_v60, %v132_v56  ;;  %v177_v17 = vmul.f32 %v164_v47, %v135_v46  ;;  %v178_v18 = vmul.f32 %v168_v48, %v135_v46  ;;  %v255_v56 = vpop.permute.xlu0 %254 }
  0xa0   :  { %v264_v14 = vrot.slane %v1187_v32, %v1229_v3  ;;  %v268_v19 = vrot.slane %v1187_v32, %v1231_v4  ;;  %v272_v20 = vrot.slane %v1189_v33, %v1229_v3  ;;  %v276_v21 = vrot.slane %v1189_v33, %v1231_v4 }
  0xa1   :  { %v241_v22 = vmul.f32 %v224_v5, %v199_v13  ;;  %v242_v23 = vmul.f32 %v228_v6, %v199_v13  ;;  %v243_v24 = vmul.f32 %v232_v7, %v199_v13  ;;  %v244_v25 = vmul.f32 %v236_v8, %v199_v13 }
  0xa2   :  { %v127_v31 = vmul.f32 %v120_v44, %v80_v61  ;;  %v128_v34 = vmul.f32 %v124_v45, %v80_v61  ;;  %v284_v39 = vrot.slane %v264_v14, %v1229_v3  ;;  %v288_v32 = vrot.slane %v268_v19, %v1229_v3 }
  0xa3   :  { %v249_v35 = vadd.f32 %v241_v22, %v189_v9  ;;  %v250_v36 = vadd.f32 %v242_v23, %v190_v10  ;;  %v251_v37 = vadd.f32 %v243_v24, %v191_v15  ;;  %v252_v38 = vadd.f32 %v244_v25, %v192_v16  ;;  %v323_v57 = vpop.permute.xlu1 %322 }
  0xa4   :  { %v292_v40 = vrot.slane %v272_v20, %v1229_v3  ;;  %v296_v41 = vrot.slane %v276_v21, %v1229_v3  ;;  %v179_v33 = vmul.f32 %v172_v49, %v135_v46  ;;  %v180_v42 = vmul.f32 %v176_v50, %v135_v46 }
  0xa5   :  { %v185_v43 = vadd.f32 %v177_v17, %v125_v11  ;;  %v186_v47 = vadd.f32 %v178_v18, %v126_v12  ;;  %v301_v48 = vmul.f32 %v284_v39, %v259_v26  ;;  %v302_v53 = vmul.f32 %v288_v32, %v259_v26 }
  0xa6   :  { %v303_v44 = vmul.f32 %v292_v40, %v259_v26  ;;  %v304_v45 = vmul.f32 %v296_v41, %v259_v26  ;;  %v237_v54 = vmul.f32 %v224_v5, %v1219_v62  ;;  %v238_v55 = vmul.f32 %v228_v6, %v1219_v62 }
  0xa7   :  { %v309_v58 = vadd.f32 %v301_v48, %v249_v35  ;;  %v310_v59 = vadd.f32 %v302_v53, %v250_v36  ;;  %v187_v63 = vadd.f32 %v179_v33, %v127_v31  ;;  %v188_v0 = vadd.f32 %v180_v42, %v128_v34  ;;  %v318_v18 = vpop.permute.xlu1 %317  ;;  %v1346_v42 = vld [vmem:[#allocation2] sm:$0xff] }
  0xa8   :  { %v311_v60 = vadd.f32 %v303_v44, %v251_v37  ;;  %v312_v61 = vadd.f32 %v304_v45, %v252_v38  ;;  %v245_v49 = vadd.f32 %v237_v54, %v185_v43  ;;  %v246_v46 = vadd.f32 %v238_v55, %v186_v47  ;;  %v1329_v38 = vld [vmem:[#allocation2 + $0x8] sm:$0xff] }
  0xa9   :  { %v297_v50 = vmul.f32 %v284_v39, %v255_v56  ;;  %v298_v1 = vmul.f32 %v288_v32, %v255_v56  ;;  %v329_v2 = vadd.f32 %v323_v57, %v309_v58  ;;  %v330_v9 = vadd.f32 %v323_v57, %v310_v59  ;;  %v1331_v39 = vld [vmem:[#allocation2 + $0x18] sm:$0xff]  ;;  %v1333_v32 = vld [vmem:[#allocation2 + $0x10] sm:$0xff] }
  0xaa   :  { %v239_v10 = vmul.f32 %v232_v7, %v1219_v62  ;;  %v240_v5 = vmul.f32 %v236_v8, %v1219_v62  ;;  %v331_v11 = vadd.f32 %v323_v57, %v311_v60  ;;  %v332_v6 = vadd.f32 %v323_v57, %v312_v61 }
  0xab   :  { %v1253_v12 = vmax.f32 %v329_v2, 0.0  ;;  %v1255_v13 = vmax.f32 %v330_v9, 0.0  ;;  %v299_v17 = vmul.f32 %v292_v40, %v255_v56  ;;  %v300_v14 = vmul.f32 %v296_v41, %v255_v56  ;;  %v854_v40 = vld [vmem:[%s1501_s5 + $0x8] sm:$0xff] }
  0xac   :  { %v247_v15 = vadd.f32 %v239_v10, %v187_v63  ;;  %v248_v16 = vadd.f32 %v240_v5, %v188_v0  ;;  %v305_v19 = vadd.f32 %v297_v50, %v245_v49  ;;  %v306_v20 = vadd.f32 %v298_v1, %v246_v46  ;;  %1023 = vmatprep.mubr.msk.f32.mxu0 %vm434_vm1, %v854_v40 }
  0xad   :  { %745 = vrot.lane.b32.xlu1 %v1255_v13, %s1103_s0  ;;  %743 = vrot.lane.b32.xlu0 %v1253_v12, %s1103_s0  ;;  %v1259_v7 = vmax.f32 %v331_v11, 0.0  ;;  %v1261_v62 = vmax.f32 %v332_v6, 0.0  ;;  %v777_v41 = vrot.slane %v1329_v38, %v1231_v4  ;;  %v785_v33 = vrot.slane %v1331_v39, %v1231_v4 }
  0xae   :  { %v325_v8 = vadd.f32 %v318_v18, %v305_v19  ;;  %v326_v21 = vadd.f32 %v318_v18, %v306_v20  ;;  %v307_v22 = vadd.f32 %v299_v17, %v247_v15  ;;  %v308_v23 = vadd.f32 %v300_v14, %v248_v16  ;;  %1024 = vmatprep.mubr.msk.f32.mxu1 %vm434_vm1, %v854_v40 }
  0xaf   :  { %v781_v43 = vrot.slane %v1333_v32, %v1231_v4  ;;  %v773_v47 = vrot.slane %v1346_v42, %v1231_v4  ;;  %v726_v6 = vrot.slane %v1331_v39, %v1217_v52  ;;  %v718_v15 = vrot.slane %v1329_v38, %v1217_v52 }
  0xb0   :  { %v327_v24 = vadd.f32 %v318_v18, %v307_v22  ;;  %v328_v25 = vadd.f32 %v318_v18, %v308_v23  ;;  %v1265_v26 = vmax.f32 %v325_v8, 0.0  ;;  %v1267_v31 = vmax.f32 %v326_v21, 0.0 }
  0xb1   :  { %749 = vrot.lane.b32.xlu1 %v1261_v62, %s1103_s0  ;;  %747 = vrot.lane.b32.xlu0 %v1259_v7, %s1103_s0  ;;  %v722_v16 = vrot.slane %v1333_v32, %v1217_v52  ;;  %v714_v17 = vrot.slane %v1346_v42, %v1217_v52 }
  0xb2   :  { %v1271_v34 = vmax.f32 %v327_v24, 0.0  ;;  %v1273_v35 = vmax.f32 %v328_v25, 0.0 }
  0xb5   :  { %737 = vrot.lane.b32.xlu1 %v1267_v31, %s1103_s0  ;;  %735 = vrot.lane.b32.xlu0 %v1265_v26, %s1103_s0 }
  0xb9   :  { %741 = vrot.lane.b32.xlu1 %v1273_v35, %s1103_s0  ;;  %739 = vrot.lane.b32.xlu0 %v1271_v34, %s1103_s0 }
  0xbd   :  { %686 = vrot.lane.b32.xlu1 %v1255_v13, %s1104_s4  ;;  %684 = vrot.lane.b32.xlu0 %v1253_v12, %s1104_s4 }
  0xc1   :  { %690 = vrot.lane.b32.xlu1 %v1261_v62, %s1104_s4  ;;  %688 = vrot.lane.b32.xlu0 %v1259_v7, %s1104_s4 }
  0xc5   :  { %678 = vrot.lane.b32.xlu1 %v1267_v31, %s1104_s4  ;;  %676 = vrot.lane.b32.xlu0 %v1265_v26, %s1104_s4 }
  0xc9   :  { %682 = vrot.lane.b32.xlu1 %v1273_v35, %s1104_s4  ;;  %680 = vrot.lane.b32.xlu0 %v1271_v34, %s1104_s4 }
  0xcd   :  { %627 = vrot.lane.b32.xlu1 %v1255_v13, %s1105_s20  ;;  %625 = vrot.lane.b32.xlu0 %v1253_v12, %s1105_s20 }
  0xd1   :  { %631 = vrot.lane.b32.xlu1 %v1261_v62, %s1105_s20  ;;  %629 = vrot.lane.b32.xlu0 %v1259_v7, %s1105_s20 }
  0xd5   :  { %619 = vrot.lane.b32.xlu1 %v1267_v31, %s1105_s20  ;;  %617 = vrot.lane.b32.xlu0 %v1265_v26, %s1105_s20 }
  0xd9   :  { %623 = vrot.lane.b32.xlu1 %v1273_v35, %s1105_s20  ;;  %621 = vrot.lane.b32.xlu0 %v1271_v34, %s1105_s20 }
  0xdd   :  { %546 = vrot.lane.b32.xlu1 %v1253_v12, %s1106_s21  ;;  %536 = vrot.lane.b32.xlu0 %v1261_v62, %s1106_s21 }
  0xe1   :  { %550 = vrot.lane.b32.xlu1 %v1259_v7, %s1106_s21  ;;  %548 = vrot.lane.b32.xlu0 %v1255_v13, %s1106_s21 }
  0xe5   :  { %540 = vrot.lane.b32.xlu1 %v1265_v26, %s1106_s21  ;;  %534 = vrot.lane.b32.xlu0 %v1273_v35, %s1106_s21 }
  0xe9   :  { %544 = vrot.lane.b32.xlu1 %v1271_v34, %s1106_s21  ;;  %542 = vrot.lane.b32.xlu0 %v1267_v31, %s1106_s21 }
  0xed   :  { %487 = vrot.lane.b32.xlu1 %v1253_v12, %s1107_s22  ;;  %477 = vrot.lane.b32.xlu0 %v1261_v62, %s1107_s22 }
  0xf1   :  { %491 = vrot.lane.b32.xlu1 %v1259_v7, %s1107_s22  ;;  %489 = vrot.lane.b32.xlu0 %v1255_v13, %s1107_s22 }
  0xf5   :  { %481 = vrot.lane.b32.xlu1 %v1265_v26, %s1107_s22  ;;  %475 = vrot.lane.b32.xlu0 %v1273_v35, %s1107_s22 }
  0xf9   :  { %485 = vrot.lane.b32.xlu1 %v1271_v34, %s1107_s22  ;;  %483 = vrot.lane.b32.xlu0 %v1267_v31, %s1107_s22 }
  0xfd   :  { %428 = vrot.lane.b32.xlu1 %v1253_v12, %s1108_s23  ;;  %418 = vrot.lane.b32.xlu0 %v1261_v62, %s1108_s23 }
 0x101   :  { %432 = vrot.lane.b32.xlu1 %v1259_v7, %s1108_s23  ;;  %430 = vrot.lane.b32.xlu0 %v1255_v13, %s1108_s23 }
 0x105   :  { %422 = vrot.lane.b32.xlu1 %v1265_v26, %s1108_s23  ;;  %416 = vrot.lane.b32.xlu0 %v1273_v35, %s1108_s23 }
 0x109   :  { %426 = vrot.lane.b32.xlu1 %v1271_v34, %s1108_s23  ;;  %424 = vrot.lane.b32.xlu0 %v1267_v31, %s1108_s23 }
 0x10d   :  { %369 = vrot.lane.b32.xlu1 %v1253_v12, %s1109_s24  ;;  %353 = vrot.lane.b32.xlu0 %v1261_v62, %s1109_s24 }
 0x111   :  { %373 = vrot.lane.b32.xlu1 %v1259_v7, %s1109_s24  ;;  %371 = vrot.lane.b32.xlu0 %v1255_v13, %s1109_s24 }
 0x115   :  { %363 = vrot.lane.b32.xlu1 %v1265_v26, %s1109_s24  ;;  %351 = vrot.lane.b32.xlu0 %v1273_v35, %s1109_s24 }
 0x119   :  { %367 = vrot.lane.b32.xlu1 %v1271_v34, %s1109_s24  ;;  %365 = vrot.lane.b32.xlu0 %v1267_v31, %s1109_s24 }
 0x11d   :  { %804 = vrot.lane.b32.xlu1 %v1255_v13, %s1110_s25  ;;  %802 = vrot.lane.b32.xlu0 %v1253_v12, %s1110_s25 }
 0x11f   :  { %v746_v36 = vpop.permute.xlu1 %745  ;;  %v744_v37 = vpop.permute.xlu0 %743 }
 0x120   :  { %v755_v48 = vsel %vm751_vm0, %v744_v37, %v746_v36 }
 0x121   :  { %808 = vrot.lane.b32.xlu1 %v1261_v62, %s1110_s25  ;;  %806 = vrot.lane.b32.xlu0 %v1259_v7, %s1110_s25  ;;  %v790_v58 = vmul.f32 %v773_v47, %v755_v48 }
 0x123   :  { %v750_v53 = vpop.permute.xlu1 %749  ;;  %v748_v44 = vpop.permute.xlu0 %747 }
 0x124   :  { %v757_v45 = vsel %vm751_vm0, %v748_v44, %v750_v53  ;;  %v756_v54 = vsel %vm751_vm0, %v746_v36, %v748_v44  ;;  %v769_v55 = vsel %vm751_vm0, %v750_v53, %v744_v37 }
 0x125   :  { %796 = vrot.lane.b32.xlu1 %v1267_v31, %s1110_s25  ;;  %794 = vrot.lane.b32.xlu0 %v1265_v26, %s1110_s25  ;;  %v791_v4 = vmul.f32 %v777_v41, %v756_v54  ;;  %v793_v56 = vmul.f32 %v785_v33, %v769_v55  ;;  %v792_v57 = vmul.f32 %v781_v43, %v757_v45 }
 0x127   :  { %v738_v59 = vpop.permute.xlu1 %737  ;;  %858 = vmatprep.subr.mxu0 %v791_v4  ;;  %929 = vmatprep.subr.mxu1 %v793_v56  ;;  %v736_v60 = vpop.permute.xlu0 %735  ;;  %v667_v4 = vrot.slane %v1331_v39, %v1185_v30  ;;  %v659_v56 = vrot.slane %v1329_v38, %v1185_v30 }
 0x128   :  { %859 = vmatpush1.msra.mxu0 %v790_v58  ;;  %930 = vmatpush1.msra.mxu1 %v792_v57  ;;  %v752_v61 = vsel %vm751_vm0, %v736_v60, %v738_v59  ;;  %v663_v57 = vrot.slane %v1333_v32, %v1185_v30  ;;  %v655_v58 = vrot.slane %v1346_v42, %v1185_v30 }
 0x129   :  { %800 = vrot.lane.b32.xlu1 %v1273_v35, %s1110_s25  ;;  %798 = vrot.lane.b32.xlu0 %v1271_v34, %s1110_s25  ;;  %v786_v10 = vmul.f32 %v773_v47, %v752_v61 }
 0x12b   :  { %v742_v63 = vpop.permute.xlu1 %741  ;;  %v740_v0 = vpop.permute.xlu0 %739 }
 0x12c   :  { %v768_v49 = vsel %vm751_vm0, %v742_v63, %v736_v60  ;;  %v753_v46 = vsel %vm751_vm0, %v738_v59, %v740_v0  ;;  %v754_v50 = vsel %vm751_vm0, %v740_v0, %v742_v63 }
 0x12d   :  { %v789_v1 = vmul.f32 %v785_v33, %v768_v49  ;;  %v787_v2 = vmul.f32 %v777_v41, %v753_v46  ;;  %v788_v9 = vmul.f32 %v781_v43, %v754_v50 }
 0x12f   :  { %v687_v5 = vpop.permute.xlu1 %686  ;;  %860 = vmatprep.subr.mxu0 %v787_v2  ;;  %931 = vmatprep.subr.mxu1 %v789_v1  ;;  %v685_v11 = vpop.permute.xlu0 %684 }
 0x130   :  { %861 = vmatpush1.msra.mxu0 %v786_v10  ;;  %932 = vmatpush1.msra.mxu1 %v788_v9  ;;  %v696_v18 = vsel %vm692_vm2, %v685_v11, %v687_v5 }
 0x131   :  { %v731_v25 = vmul.f32 %v714_v17, %v696_v18 }
 0x133   :  { %v691_v14 = vpop.permute.xlu1 %690  ;;  %v689_v19 = vpop.permute.xlu0 %688 }
 0x134   :  { %v710_v20 = vsel %vm692_vm2, %v691_v14, %v685_v11  ;;  %v697_v8 = vsel %vm692_vm2, %v687_v5, %v689_v19  ;;  %v698_v21 = vsel %vm692_vm2, %v689_v19, %v691_v14  ;;  %v604_v19 = vrot.slane %v1333_v32, %v1181_v28 }
 0x135   :  { %v734_v22 = vmul.f32 %v726_v6, %v710_v20  ;;  %v732_v23 = vmul.f32 %v718_v15, %v697_v8  ;;  %v733_v24 = vmul.f32 %v722_v16, %v698_v21 }
 0x137   :  { %v679_v36 = vpop.permute.xlu1 %678  ;;  %862 = vmatprep.subr.mxu0 %v732_v23  ;;  %933 = vmatprep.subr.mxu1 %v734_v22  ;;  %v677_v37 = vpop.permute.xlu0 %676 }
 0x138   :  { %863 = vmatpush1.msra.mxu0 %v731_v25  ;;  %934 = vmatpush1.msra.mxu1 %v733_v24  ;;  %v693_v52 = vsel %vm692_vm2, %v677_v37, %v679_v36 }
 0x139   :  { %v727_v45 = vmul.f32 %v714_v17, %v693_v52  ;;  %v615_v52 = vmul.f32 %v604_v19, %v1259_v7 }
 0x13b   :  { %v683_v40 = vpop.permute.xlu1 %682  ;;  %v681_v41 = vpop.permute.xlu0 %680 }
 0x13c   :  { %v709_v33 = vsel %vm692_vm2, %v683_v40, %v677_v37  ;;  %v694_v43 = vsel %vm692_vm2, %v679_v36, %v681_v41  ;;  %v695_v47 = vsel %vm692_vm2, %v681_v41, %v683_v40  ;;  %v584_v41 = vrot.slane %v1331_v39, %v1229_v3 }
 0x13d   :  { %v730_v48 = vmul.f32 %v726_v6, %v709_v33  ;;  %v728_v53 = vmul.f32 %v718_v15, %v694_v43  ;;  %v729_v44 = vmul.f32 %v722_v16, %v695_v47  ;;  %v600_v6 = vrot.slane %v1329_v38, %v1181_v28 }
 0x13e   :  { %v608_v15 = vrot.slane %v1331_v39, %v1181_v28  ;;  %v596_v16 = vrot.slane %v1346_v42, %v1181_v28 }
 0x13f   :  { %v628_v54 = vpop.permute.xlu1 %627  ;;  %864 = vmatprep.subr.mxu0 %v728_v53  ;;  %935 = vmatprep.subr.mxu1 %v730_v48  ;;  %v626_v55 = vpop.permute.xlu0 %625  ;;  %v614_v25 = vmul.f32 %v600_v6, %v1255_v13  ;;  %v610_v28 = vmul.f32 %v600_v6, %v1267_v31  ;;  %v576_v13 = vrot.slane %v1329_v38, %v1229_v3 }
 0x140   :  { %865 = vmatpush1.msra.mxu0 %v727_v45  ;;  %936 = vmatpush1.msra.mxu1 %v729_v44  ;;  %v637_v59 = vsel %vm633_vm3, %v626_v55, %v628_v54  ;;  %v616_v36 = vmul.f32 %v608_v15, %v1261_v62  ;;  %v613_v37 = vmul.f32 %v596_v16, %v1253_v12 }
 0x141   :  { %v672_v2 = vmul.f32 %v655_v58, %v637_v59  ;;  %v612_v40 = vmul.f32 %v608_v15, %v1273_v35  ;;  %v580_v12 = vrot.slane %v1333_v32, %v1229_v3  ;;  %v572_v62 = vrot.slane %v1346_v42, %v1229_v3 }
 0x142   :  { %v609_v7 = vmul.f32 %v596_v16, %v1265_v26  ;;  %v611_v31 = vmul.f32 %v604_v19, %v1271_v34 }
 0x143   :  { %v632_v60 = vpop.permute.xlu1 %631  ;;  %v630_v61 = vpop.permute.xlu0 %629 }
 0x144   :  { %v651_v63 = vsel %vm633_vm3, %v632_v60, %v626_v55  ;;  %v638_v0 = vsel %vm633_vm3, %v628_v54, %v630_v61  ;;  %v639_v49 = vsel %vm633_vm3, %v630_v61, %v632_v60 }
 0x145   :  { %v675_v46 = vmul.f32 %v667_v4, %v651_v63  ;;  %v673_v50 = vmul.f32 %v659_v56, %v638_v0  ;;  %v674_v1 = vmul.f32 %v663_v57, %v639_v49 }
 0x147   :  { %v620_v9 = vpop.permute.xlu1 %619  ;;  %866 = vmatprep.subr.mxu0 %v673_v50  ;;  %937 = vmatprep.subr.mxu1 %v675_v46  ;;  %v618_v10 = vpop.permute.xlu0 %617  ;;  %v525_v50 = vrot.slane %v1331_v39, %v1215_v51 }
 0x148   :  { %867 = vmatpush1.msra.mxu0 %v672_v2  ;;  %938 = vmatpush1.msra.mxu1 %v674_v1  ;;  %v634_v30 = vsel %vm633_vm3, %v618_v10, %v620_v9  ;;  %v517_v1 = vrot.slane %v1329_v38, %v1215_v51  ;;  %v521_v2 = vrot.slane %v1333_v32, %v1215_v51 }
 0x149   :  { %v668_v22 = vmul.f32 %v655_v58, %v634_v30 }
 0x14b   :  { %v624_v5 = vpop.permute.xlu1 %623  ;;  %v622_v11 = vpop.permute.xlu0 %621 }
 0x14c   :  { %v650_v17 = vsel %vm633_vm3, %v624_v5, %v618_v10  ;;  %v635_v18 = vsel %vm633_vm3, %v620_v9, %v622_v11  ;;  %v636_v14 = vsel %vm633_vm3, %v622_v11, %v624_v5  ;;  %v513_v9 = vrot.slane %v1346_v42, %v1215_v51 }
 0x14d   :  { %v671_v20 = vmul.f32 %v667_v4, %v650_v17  ;;  %v669_v8 = vmul.f32 %v659_v56, %v635_v18  ;;  %v670_v21 = vmul.f32 %v663_v57, %v636_v14 }
 0x14f   :  { %v547_v23 = vpop.permute.xlu1 %546  ;;  %868 = vmatprep.subr.mxu0 %v669_v8  ;;  %939 = vmatprep.subr.mxu1 %v671_v20  ;;  %v537_v24 = vpop.permute.xlu0 %536 }
 0x150   :  { %869 = vmatpush1.msra.mxu0 %v668_v22  ;;  %940 = vmatpush1.msra.mxu1 %v670_v21  ;;  %v568_v35 = vsel %vm552_vm4, %v537_v24, %v547_v23 }
 0x151   :  { %870 = vmatprep.subr.mxu0 %v614_v25  ;;  %941 = vmatprep.subr.mxu1 %v616_v36  ;;  %v589_v26 = vmul.f32 %v572_v62, %v568_v35 }
 0x152   :  { %871 = vmatpush1.msra.mxu0 %v613_v37  ;;  %942 = vmatpush1.msra.mxu1 %v615_v52 }
 0x153   :  { %v551_v33 = vpop.permute.xlu1 %550  ;;  %872 = vmatprep.subr.mxu0 %v610_v28  ;;  %943 = vmatprep.subr.mxu1 %v612_v40  ;;  %v549_v43 = vpop.permute.xlu0 %548 }
 0x154   :  { %v558_v47 = vsel %vm552_vm4, %v551_v33, %v537_v24  ;;  %v556_v48 = vsel %vm552_vm4, %v547_v23, %v549_v43  ;;  %v557_v53 = vsel %vm552_vm4, %v549_v43, %v551_v33  ;;  %873 = vmatpush1.msra.mxu0 %v609_v7  ;;  %944 = vmatpush1.msra.mxu1 %v611_v31 }
 0x155   :  { %v592_v3 = vmul.f32 %v584_v41, %v558_v47  ;;  %v590_v44 = vmul.f32 %v576_v13, %v556_v48  ;;  %v591_v45 = vmul.f32 %v580_v12, %v557_v53 }
 0x157   :  { %v541_v54 = vpop.permute.xlu1 %540  ;;  %945 = vmatprep.subr.mxu1 %v592_v3  ;;  %v535_v34 = vpop.permute.xlu0 %534  ;;  %874 = vmatprep.subr.mxu0 %v590_v44 }
 0x158   :  { %875 = vmatpush1.msra.mxu0 %v589_v26  ;;  %946 = vmatpush1.msra.mxu1 %v591_v45  ;;  %v567_v55 = vsel %vm552_vm4, %v535_v34, %v541_v54 }
 0x159   :  { %v585_v0 = vmul.f32 %v572_v62, %v567_v55  ;;  %v454_v62 = vrot.slane %v1346_v42, %v1183_v29 }
 0x15b   :  { %v545_v4 = vpop.permute.xlu1 %544  ;;  %v543_v56 = vpop.permute.xlu0 %542 }
 0x15c   :  { %v555_v57 = vsel %vm552_vm4, %v545_v4, %v535_v34  ;;  %v553_v58 = vsel %vm552_vm4, %v541_v54, %v543_v56  ;;  %v554_v59 = vsel %vm552_vm4, %v543_v56, %v545_v4 }
 0x15d   :  { %v588_v60 = vmul.f32 %v584_v41, %v555_v57  ;;  %v586_v61 = vmul.f32 %v576_v13, %v553_v58  ;;  %v587_v63 = vmul.f32 %v580_v12, %v554_v59  ;;  %v466_v41 = vrot.slane %v1331_v39, %v1183_v29 }
 0x15e   :  { %v458_v13 = vrot.slane %v1329_v38, %v1183_v29  ;;  %v462_v12 = vrot.slane %v1333_v32, %v1183_v29 }
 0x15f   :  { %v488_v49 = vpop.permute.xlu1 %487  ;;  %947 = vmatprep.subr.mxu1 %v588_v60  ;;  %v478_v46 = vpop.permute.xlu0 %477  ;;  %876 = vmatprep.subr.mxu0 %v586_v61 }
 0x160   :  { %877 = vmatpush1.msra.mxu0 %v585_v0  ;;  %948 = vmatpush1.msra.mxu1 %v587_v63  ;;  %v509_v10 = vsel %vm493_vm5, %v478_v46, %v488_v49  ;;  %v407_v0 = vrot.slane %v1331_v39, %v1179_v27 }
 0x161   :  { %v530_v14 = vmul.f32 %v513_v9, %v509_v10 }
 0x163   :  { %v492_v30 = vpop.permute.xlu1 %491  ;;  %v490_v5 = vpop.permute.xlu0 %489 }
 0x164   :  { %v499_v11 = vsel %vm493_vm5, %v492_v30, %v478_v46  ;;  %v497_v6 = vsel %vm493_vm5, %v488_v49, %v490_v5  ;;  %v498_v15 = vsel %vm493_vm5, %v490_v5, %v492_v30  ;;  %v399_v49 = vrot.slane %v1329_v38, %v1179_v27 }
 0x165   :  { %v533_v16 = vmul.f32 %v525_v50, %v499_v11  ;;  %v531_v17 = vmul.f32 %v517_v1, %v497_v6  ;;  %v532_v18 = vmul.f32 %v521_v2, %v498_v15  ;;  %v403_v46 = vrot.slane %v1333_v32, %v1179_v27 }
 0x167   :  { %v482_v19 = vpop.permute.xlu1 %481  ;;  %949 = vmatprep.subr.mxu1 %v533_v16  ;;  %v476_v20 = vpop.permute.xlu0 %475  ;;  %878 = vmatprep.subr.mxu0 %v531_v17 }
 0x168   :  { %879 = vmatpush1.msra.mxu0 %v530_v14  ;;  %950 = vmatpush1.msra.mxu1 %v532_v18  ;;  %v508_v51 = vsel %vm493_vm5, %v476_v20, %v482_v19 }
 0x169   :  { %v526_v52 = vmul.f32 %v513_v9, %v508_v51 }
 0x16b   :  { %v486_v8 = vpop.permute.xlu1 %485  ;;  %v484_v21 = vpop.permute.xlu0 %483 }
 0x16c   :  { %v496_v22 = vsel %vm493_vm5, %v486_v8, %v476_v20  ;;  %v494_v23 = vsel %vm493_vm5, %v482_v19, %v484_v21  ;;  %v495_v24 = vsel %vm493_vm5, %v484_v21, %v486_v8 }
 0x16d   :  { %v529_v25 = vmul.f32 %v525_v50, %v496_v22  ;;  %v527_v36 = vmul.f32 %v517_v1, %v494_v23  ;;  %v528_v37 = vmul.f32 %v521_v2, %v495_v24  ;;  %v395_v50 = vrot.slane %v1346_v42, %v1179_v27  ;;  %v1022_v23 = vld [vmem:[#allocation2 + $0x38] ss:$0 sm:$0xff]  ;;  %v1020_v24 = vld [vmem:[#allocation2 + $0x28] ss:$0 sm:$0xff] }
 0x16f   :  { %v429_v28 = vpop.permute.xlu1 %428  ;;  %951 = vmatprep.subr.mxu1 %v529_v25  ;;  %v419_v40 = vpop.permute.xlu0 %418  ;;  %880 = vmatprep.subr.mxu0 %v527_v36  ;;  %v1021_v25 = vld [vmem:[#allocation2 + $0x30] ss:$0 sm:$0xff]  ;;  %v1019_v36 = vld [vmem:[#allocation2 + $0x20] ss:$0 sm:$0xff] }
 0x170   :  { %881 = vmatpush1.msra.mxu0 %v526_v52  ;;  %952 = vmatpush1.msra.mxu1 %v528_v37  ;;  %v450_v7 = vsel %vm434_vm1, %v419_v40, %v429_v28 }
 0x171   :  { %v471_v44 = vmul.f32 %v454_v62, %v450_v7 }
 0x173   :  { %v433_v31 = vpop.permute.xlu1 %432  ;;  %v431_v35 = vpop.permute.xlu0 %430 }
 0x174   :  { %v440_v33 = vsel %vm434_vm1, %v433_v31, %v419_v40  ;;  %v438_v43 = vsel %vm434_vm1, %v429_v28, %v431_v35  ;;  %v439_v47 = vsel %vm434_vm1, %v431_v35, %v433_v31 }
 0x175   :  { %v474_v48 = vmul.f32 %v466_v41, %v440_v33  ;;  %v472_v53 = vmul.f32 %v458_v13, %v438_v43  ;;  %v473_v3 = vmul.f32 %v462_v12, %v439_v47 }
 0x177   :  { %v423_v45 = vpop.permute.xlu1 %422  ;;  %953 = vmatprep.subr.mxu1 %v474_v48  ;;  %v417_v26 = vpop.permute.xlu0 %416  ;;  %882 = vmatprep.subr.mxu0 %v472_v53 }
 0x178   :  { %883 = vmatpush1.msra.mxu0 %v471_v44  ;;  %954 = vmatpush1.msra.mxu1 %v473_v3  ;;  %v449_v29 = vsel %vm434_vm1, %v417_v26, %v423_v45 }
 0x179   :  { %v467_v60 = vmul.f32 %v454_v62, %v449_v29 }
 0x17b   :  { %v427_v54 = vpop.permute.xlu1 %426  ;;  %v425_v34 = vpop.permute.xlu0 %424 }
 0x17c   :  { %v437_v55 = vsel %vm434_vm1, %v427_v54, %v417_v26  ;;  %v435_v4 = vsel %vm434_vm1, %v423_v45, %v425_v34  ;;  %v436_v56 = vsel %vm434_vm1, %v425_v34, %v427_v54  ;;  %v853_v34 = vld [vmem:[%s1501_s5] sm:$0xff] }
 0x17d   :  { %v470_v57 = vmul.f32 %v466_v41, %v437_v55  ;;  %v468_v58 = vmul.f32 %v458_v13, %v435_v4  ;;  %v469_v59 = vmul.f32 %v462_v12, %v436_v56 }
 0x17f   :  { %v370_v61 = vpop.permute.xlu1 %369  ;;  %955 = vmatprep.subr.mxu1 %v470_v57  ;;  %v354_v63 = vpop.permute.xlu0 %353  ;;  %884 = vmatprep.subr.mxu0 %v468_v58 }
 0x180   :  { %885 = vmatpush1.msra.mxu0 %v467_v60  ;;  %956 = vmatpush1.msra.mxu1 %v469_v59  ;;  %v391_v1 = vsel %vm375_vm6, %v354_v63, %v370_v61 }
 0x181   :  { %v412_v38 = vmul.f32 %v395_v50, %v391_v1 }
 0x183   :  { %v374_v2 = vpop.permute.xlu1 %373  ;;  %v372_v9 = vpop.permute.xlu0 %371 }
 0x184   :  { %v381_v10 = vsel %vm375_vm6, %v374_v2, %v354_v63  ;;  %v379_v30 = vsel %vm375_vm6, %v370_v61, %v372_v9  ;;  %v380_v5 = vsel %vm375_vm6, %v372_v9, %v374_v2 }
 0x185   :  { %v415_v39 = vmul.f32 %v407_v0, %v381_v10  ;;  %v413_v11 = vmul.f32 %v399_v49, %v379_v30  ;;  %v414_v6 = vmul.f32 %v403_v46, %v380_v5 }
 0x187   :  { %v364_v15 = vpop.permute.xlu1 %363  ;;  %957 = vmatprep.subr.mxu1 %v415_v39  ;;  %v352_v32 = vpop.permute.xlu0 %351  ;;  %886 = vmatprep.subr.mxu0 %v413_v11 }
 0x188   :  { %887 = vmatpush1.msra.mxu0 %v412_v38  ;;  %958 = vmatpush1.msra.mxu1 %v414_v6  ;;  %v390_v27 = vsel %vm375_vm6, %v352_v32, %v364_v15 }
 0x189   :  { %v408_v8 = vmul.f32 %v395_v50, %v390_v27 }
 0x18b   :  { %v368_v42 = vpop.permute.xlu1 %367  ;;  %v366_v16 = vpop.permute.xlu0 %365 }
 0x18c   :  { %v378_v17 = vsel %vm375_vm6, %v368_v42, %v352_v32  ;;  %v376_v18 = vsel %vm375_vm6, %v364_v15, %v366_v16  ;;  %v377_v14 = vsel %vm375_vm6, %v366_v16, %v368_v42 }
 0x18d   :  { %v411_v19 = vmul.f32 %v407_v0, %v378_v17  ;;  %v409_v20 = vmul.f32 %v399_v49, %v376_v18  ;;  %v410_v51 = vmul.f32 %v403_v46, %v377_v14 }
 0x18f   :  { %v805_v21 = vpop.permute.xlu1 %804  ;;  %959 = vmatprep.subr.mxu1 %v411_v19  ;;  %v803_v22 = vpop.permute.xlu0 %802  ;;  %888 = vmatprep.subr.mxu0 %v409_v20 }
 0x190   :  { %889 = vmatpush1.msra.mxu0 %v408_v8  ;;  %960 = vmatpush1.msra.mxu1 %v410_v51  ;;  %v814_v37 = vsel %vm810_vm7, %v803_v22, %v805_v21 }
 0x191   :  { %v849_v31 = vmul.f32 %v1019_v36, %v814_v37 }
 0x193   :  { %v809_v52 = vpop.permute.xlu1 %808  ;;  %v807_v28 = vpop.permute.xlu0 %806 }
 0x194   :  { %v828_v40 = vsel %vm810_vm7, %v809_v52, %v803_v22  ;;  %v815_v41 = vsel %vm810_vm7, %v805_v21, %v807_v28  ;;  %v816_v13 = vsel %vm810_vm7, %v807_v28, %v809_v52 }
 0x195   :  { %v852_v12 = vmul.f32 %v1022_v23, %v828_v40  ;;  %v850_v62 = vmul.f32 %v1020_v24, %v815_v41  ;;  %v851_v7 = vmul.f32 %v1021_v25, %v816_v13 }
 0x197   :  { %v797_v35 = vpop.permute.xlu1 %796  ;;  %989 = vmatprep.subr.mxu1 %v852_v12  ;;  %v795_v33 = vpop.permute.xlu0 %794  ;;  %918 = vmatprep.subr.mxu0 %v850_v62 }
 0x198   :  { %919 = vmatpush2.msra.mxu0 %v849_v31  ;;  %990 = vmatpush2.msra.mxu1 %v851_v7  ;;  %v811_v43 = vsel %vm810_vm7, %v795_v33, %v797_v35 }
 0x199   :  { %v845_v54 = vmul.f32 %v1019_v36, %v811_v43 }
 0x19b   :  { %v801_v47 = vpop.permute.xlu1 %800  ;;  %v799_v48 = vpop.permute.xlu0 %798 }
 0x19c   :  { %v827_v53 = vsel %vm810_vm7, %v801_v47, %v795_v33  ;;  %v812_v3 = vsel %vm810_vm7, %v797_v35, %v799_v48  ;;  %v813_v44 = vsel %vm810_vm7, %v799_v48, %v801_v47 }
 0x19d   :  { %v848_v45 = vmul.f32 %v1022_v23, %v827_v53  ;;  %v846_v26 = vmul.f32 %v1020_v24, %v812_v3  ;;  %v847_v29 = vmul.f32 %v1021_v25, %v813_v44 }
 0x19f   :  { %920 = vmatprep.subr.mxu0 %v846_v26  ;;  %991 = vmatprep.subr.mxu1 %v848_v45 }
 0x1a0   :  { %921 = vmatpush2.msra.mxu0 %v845_v54  ;;  %992 = vmatpush2.msra.mxu1 %v847_v29 }
 0x1a1   :  { %923 = vmatmul.mubr.f32.vlgmr.msra.gmra.mxu0 %v853_v34  ;;  %994 = vmatmul.mubr.f32.vlgmr.msra.gmra.mxu1 %v853_v34 }
 0x261   :  { %v924_v55 = vpop.f32.mrf.mxu0  ;;  %v995_v4 = vpop.f32.mrf.mxu1 }
 0x262   :  { %1000 = vst [vmem:[#allocation5] sm:$0xff] %v924_v55  ;;  %1002 = vst [vmem:[#allocation5 + $0x10] sm:$0xff] %v995_v4 }
 0x263   :  { %v926_v56 = vpop.f32.mrf.mxu0  ;;  %v997_v57 = vpop.f32.mrf.mxu1 }
 0x264   :  { %1001 = vst [vmem:[#allocation5 + $0x8] sm:$0xff] %v926_v56  ;;  %1003 = vst [vmem:[#allocation5 + $0x18] sm:$0xff] %v997_v57 }
 0x265   :  { %1082 = shalt.err (!%p1079_p9)
}
 0x266   :  { %1013 = dma.vmem_to_hbm [thread:$0]  %s1011_s8, 512, %s1503_s7, [#allocation4]  }
 0x267   :  { %1093 = dma.done.wait [#allocation4], 512  }
 0x268   :  { %1094 = vsyncadd [#allocation4], 4294966784 }
 0x269   :  { %1017 = vsyncpa [#allocation3], 1 }
 0x26a   :  { %1018 = vsyncpa [#allocation4], 1 }

</bundles_post_ra>
